<compile_context>
chip_gen: v7x
topology: tpu7x:2x2x1
jax: 0.10.0
libtpu: 0.0.40
codegen_flags: <defaults>
</compile_context>

<pallas_src>
import functools

import jax
import jax.numpy as jnp
from jax import lax
from jax.experimental import pallas as pl
from jax.experimental.pallas import tpu as pltpu

NUM_GROUP = 4
LOCAL_RANK = 16
GN_EPS = 1e-3

_LANE = 128
_TN_DEFAULT = 512      # spatial (lane) tile of the conv matmul
_TK_FULL_MAX = 2048    # keep the whole K axis resident up to this size
_TK_TILE = 512         # K tile when K must be split (rare for Inception)


def _round_up(x, m):
    return ((x + m - 1) // m) * m


# ---------------------------------------------------------------------------
# Kernel 1: tiled conv-as-matmul
#   out[n, :, j-tile] = W @ patches[n, :, j-tile] + b
# ---------------------------------------------------------------------------
def _conv_matmul_kernel(w_ref, p_ref, b_ref, o_ref, acc_ref):
    # w: (Cout, tk) bf16, p: (tk, tn) bf16, b: (Cout, 1) f32
    # o: (Cout, tn) f32 (resident across the k axis), acc: (Cout, tn) f32
    k = pl.program_id(2)

    @pl.when(k == 0)
    def _init():
        acc_ref[...] = jnp.zeros_like(acc_ref)

    acc_ref[...] += jnp.dot(w_ref[...], p_ref[...],
                            preferred_element_type=jnp.float32)

    @pl.when(k == pl.num_programs(2) - 1)
    def _finish():
        o_ref[...] = (acc_ref[...] + b_ref[...]).astype(o_ref.dtype)


# ---------------------------------------------------------------------------
# Kernel 2: GroupNorm (per (n, group) stats, biased variance) + affine + ReLU
# ---------------------------------------------------------------------------
def _gn_relu_kernel(x_ref, g_ref, b_ref, o_ref, *, eps, hw_valid):
    # x: (1, G, Cg, HWp) f32; gamma/beta: (1, G, Cg, 1) f32
    x = x_ref[...].astype(jnp.float32)
    cg, hwp = x.shape[2], x.shape[3]
    if hw_valid != hwp:
        # Spatial padding columns must not pollute the statistics.
        lane = lax.broadcasted_iota(jnp.int32, x.shape, dimension=3)
        xv = jnp.where(lane < hw_valid, x, 0.0)
    else:
        xv = x
    inv_cnt = 1.0 / float(cg * hw_valid)
    s = jnp.sum(xv, axis=(2, 3), keepdims=True)
    ss = jnp.sum(xv * xv, axis=(2, 3), keepdims=True)
    mean = s * inv_cnt
    var = ss * inv_cnt - mean * mean          # one-pass stats: single read of x
    inv = lax.rsqrt(var + eps)                # EUP slot
    y = (x - mean) * inv * g_ref[...] + b_ref[...]
    o_ref[...] = jnp.maximum(y, 0.0).astype(o_ref.dtype)


# ---------------------------------------------------------------------------
# Wrapper
# ---------------------------------------------------------------------------
def basic_conv2d(x, weight, bias, gamma, beta, *, stride=1, padding=1,
                 eps=GN_EPS, compute_dtype=jnp.bfloat16, tn=_TN_DEFAULT):
    N, Cin, H, W = x.shape
    Cout, _, kh, kw = weight.shape
    G = NUM_GROUP
    assert Cout % G == 0, (Cout, G)
    Cg = Cout // G

    # --- im2col glue (plain JAX). Feature order is (Cin, kh, kw), matching
    #     weight.reshape(Cout, Cin*kh*kw); kept as (N, K, HW) -- no transpose.
    patches = lax.conv_general_dilated_patches(
        x.astype(compute_dtype),
        filter_shape=(kh, kw),
        window_strides=(stride, stride),
        padding=((padding, padding), (padding, padding)),
        dimension_numbers=("NCHW", "OIHW", "NCHW"),
    )  # (N, Cin*kh*kw, Ho, Wo)
    _, K, Ho, Wo = patches.shape
    HW = Ho * Wo
    patches = patches.reshape(N, K, HW)

    w_mat = weight.reshape(Cout, K).astype(compute_dtype)
    b_col = bias.reshape(Cout, 1).astype(jnp.float32)

    # --- tile sizing --------------------------------------------------------
    HW_pad = _round_up(HW, _LANE)          # lane-dense (unmasked) stores
    tn = _round_up(min(tn, HW_pad), _LANE)
    nm = pl.cdiv(HW_pad, tn)

    if K <= _TK_FULL_MAX:
        tk, K_pad = K, K
    else:
        tk = _TK_TILE
        K_pad = _round_up(K, tk)
        w_mat = jnp.pad(w_mat, ((0, 0), (0, K_pad - K)))
        patches = jnp.pad(patches, ((0, 0), (0, K_pad - K), (0, 0)))
    nk = K_pad // tk

    # --- conv hot path: pipelined MXU matmul, output directly in (N,Cout,HW)
    conv_out = pl.pallas_call(
        _conv_matmul_kernel,
        out_shape=jax.ShapeDtypeStruct((N, Cout, HW_pad), jnp.float32),
        grid=(N, nm, nk),
        in_specs=[
            pl.BlockSpec((Cout, tk), lambda n, j, k: (0, k)),        # weight
            pl.BlockSpec((None, tk, tn), lambda n, j, k: (n, k, j)),  # patches
            pl.BlockSpec((Cout, 1), lambda n, j, k: (0, 0)),          # bias
        ],
        out_specs=pl.BlockSpec((None, Cout, tn), lambda n, j, k: (n, 0, j)),
        scratch_shapes=[pltpu.VMEM((Cout, tn), jnp.float32)],
        compiler_params=pltpu.CompilerParams(
            dimension_semantics=("parallel", "parallel", "arbitrary")),
    )(w_mat, patches, b_col)

    # --- GroupNorm + ReLU: free reshape (no transpose), one block per sample
    y4 = conv_out.reshape(N, G, Cg, HW_pad)
    gamma4 = gamma.reshape(1, G, Cg, 1).astype(jnp.float32)
    beta4 = beta.reshape(1, G, Cg, 1).astype(jnp.float32)

    out4 = pl.pallas_call(
        functools.partial(_gn_relu_kernel, eps=eps, hw_valid=HW),
        out_shape=jax.ShapeDtypeStruct((N, G, Cg, HW_pad), jnp.float32),
        grid=(N,),
        in_specs=[
            pl.BlockSpec((1, G, Cg, HW_pad), lambda n: (n, 0, 0, 0)),
            pl.BlockSpec((1, G, Cg, 1), lambda n: (0, 0, 0, 0)),
            pl.BlockSpec((1, G, Cg, 1), lambda n: (0, 0, 0, 0)),
        ],
        out_specs=pl.BlockSpec((1, G, Cg, HW_pad), lambda n: (n, 0, 0, 0)),
        compiler_params=pltpu.CompilerParams(
            dimension_semantics=("parallel",)),
    )(y4, gamma4, beta4)
    # TODO(synk): for very large Cout*HW (v7x 64 MiB VMEM) tile GN over HW with
    # a two-pass sum/sumsq scheme instead of one resident block per sample.

    out = out4.reshape(N, Cout, HW_pad)
    if HW_pad != HW:
        out = out[:, :, :HW]
    return out.reshape(N, Cout, Ho, Wo)


# ---------------------------------------------------------------------------
# Demo / smoke test
# ---------------------------------------------------------------------------
if __name__ == "__main__":
    key = jax.random.PRNGKey(0)
    k1, k2, k3, k4, k5, k6 = jax.random.split(key, 6)

    # Small shapes consistent with the module: NCHW input, 3x3 conv, pad=1.
    N, Cin, H, W = 2, 4, 16, 16
    Cout, kh, kw = 8, 3, 3
    stride, padding = 1, 1

    x = jax.random.normal(k1, (N, Cin, H, W), jnp.float32)

    # LrkConv2d params: rank-LOCAL_RANK factored weight W = L @ R
    # (forward pass is an ordinary conv with this weight).
    L = jax.random.normal(k2, (Cout, LOCAL_RANK), jnp.float32) * 0.1
    R = jax.random.normal(k3, (LOCAL_RANK, Cin * kh * kw), jnp.float32) * 0.1
    weight = (L @ R).reshape(Cout, Cin, kh, kw)
    bias = jax.random.normal(k4, (Cout,), jnp.float32) * 0.01

    # GroupNorm affine params (non-trivial values to exercise the path).
    gamma = 1.0 + 0.1 * jax.random.normal(k5, (Cout,), jnp.float32)
    beta = 0.1 * jax.random.normal(k6, (Cout,), jnp.float32)

    out = basic_conv2d(x, weight, bias, gamma, beta,
                       stride=stride, padding=padding)
    jax.block_until_ready(out)
    assert out.shape == (N, Cout, H, W), out.shape
    assert bool(jnp.all(out >= 0.0))  # ReLU post-condition

    # Reference: XLA conv + f32 GroupNorm + ReLU. Validates the im2col feature
    # ordering and GN semantics (kernel matmul is bf16 -> loose tolerance).
    conv_ref = lax.conv_general_dilated(
        x, weight, (stride, stride),
        ((padding, padding), (padding, padding)),
        dimension_numbers=("NCHW", "OIHW", "NCHW"),
        precision=lax.Precision.HIGHEST,
    ) + bias[None, :, None, None]
    xr = conv_ref.reshape(N, NUM_GROUP, Cout // NUM_GROUP, -1)
    mean = xr.mean(axis=(2, 3), keepdims=True)
    var = ((xr - mean) ** 2).mean(axis=(2, 3), keepdims=True)
    yr = ((xr - mean) / jnp.sqrt(var + GN_EPS)).reshape(N, Cout, H, W)
    ref = jnp.maximum(yr * gamma[None, :, None, None]
                      + beta[None, :, None, None], 0.0)
    max_err = float(jnp.max(jnp.abs(out - ref)))
    assert max_err < 0.05, f"max abs error vs reference: {max_err}"

    print("KERNEL_OK")
</pallas_src>

<mosaic_0001>
module attributes {stable_mosaic.version = 11 : i64} {
  func.func @_conv_matmul_kernel(%arg0: i32, %arg1: i32, %arg2: i32, %arg3: memref<8x36xbf16, #tpu.memory_space<vmem>>, %arg4: memref<1x36x256xbf16, #tpu.memory_space<vmem>>, %arg5: memref<8x1xf32, #tpu.memory_space<vmem>>, %arg6: memref<1x8x256xf32, #tpu.memory_space<vmem>>, %arg7: memref<8x256xf32, #tpu.memory_space<vmem>>) attributes {dimension_semantics = [#tpu.dimension_semantics<parallel>, #tpu.dimension_semantics<parallel>, #tpu.dimension_semantics<arbitrary>], iteration_bounds = array<i64: 2, 1, 1>, scalar_prefetch = 0 : i64, scratch_operands = 1 : i64, tpu.core_type = #tpu.core_type<tc>, window_params = [{transform_indices = @transform_0, window_bounds = array<i64: 8, 36>}, {transform_indices = @transform_1, window_bounds = array<i64: 1, 36, 256>}, {pipeline_mode = #tpu.pipeline_mode<synchronous>, transform_indices = @transform_2, window_bounds = array<i64: 8, 1>}, {transform_indices = @transform_3, window_bounds = array<i64: 1, 8, 256>}]} {
    %c0_i32 = arith.constant 0 : i32
    %0 = arith.cmpi eq, %arg2, %c0_i32 : i32
    %1 = arith.extui %0 : i1 to i32
    %c0_i32_0 = arith.constant 0 : i32
    %2 = arith.cmpi ne, %1, %c0_i32_0 : i32
    scf.if %2 {
      %cst_11 = arith.constant 0.000000e+00 : f32
      %13 = vector.broadcast %cst_11 : f32 to vector<8x256xf32>
      %c0_12 = arith.constant 0 : index
      %c0_13 = arith.constant 0 : index
      %14 = vector.load %arg7[%c0_12, %c0_13] : memref<8x256xf32, #tpu.memory_space<vmem>>, vector<8x256xf32>
      tpu.vector_store %arg7[%c0_12, %c0_13], %13 {strides = array<i32>} : memref<8x256xf32, #tpu.memory_space<vmem>>, vector<8x256xf32>,
    } else {
    }
    %c0 = arith.constant 0 : index
    %c0_1 = arith.constant 0 : index
    %3 = vector.load %arg7[%c0, %c0_1] : memref<8x256xf32, #tpu.memory_space<vmem>>, vector<8x256xf32>
    %c0_2 = arith.constant 0 : index
    %c0_3 = arith.constant 0 : index
    %4 = vector.load %arg3[%c0_2, %c0_3] : memref<8x36xbf16, #tpu.memory_space<vmem>>, vector<8x36xbf16>
    %c0_4 = arith.constant 0 : index
    %c0_5 = arith.constant 0 : index
    %c0_6 = arith.constant 0 : index
    %5 = vector.load %arg4[%c0_4, %c0_5, %c0_6] : memref<1x36x256xbf16, #tpu.memory_space<vmem>>, vector<1x36x256xbf16>
    %6 = vector.shape_cast %5 : vector<1x36x256xbf16> to vector<36x256xbf16>
    %cst = arith.constant dense<0.000000e+00> : vector<8x256xf32>
    %7 = tpu.matmul %4, %6, %cst {dimension_numbers = #tpu.dot_dimension_numbers<[1], [0], [0], [1], [0, 0, 1, 1], [], []>} : vector<8x36xbf16>, vector<36x256xbf16>, vector<8x256xf32> -> vector<8x256xf32>
    %8 = arith.addf %3, %7 : vector<8x256xf32>
    %c0_7 = arith.constant 0 : index
    %c0_8 = arith.constant 0 : index
    %9 = vector.load %arg7[%c0_7, %c0_8] : memref<8x256xf32, #tpu.memory_space<vmem>>, vector<8x256xf32>
    tpu.vector_store %arg7[%c0_7, %c0_8], %8 {strides = array<i32>} : memref<8x256xf32, #tpu.memory_space<vmem>>, vector<8x256xf32>,
    %c0_i32_9 = arith.constant 0 : i32
    %10 = arith.cmpi eq, %arg2, %c0_i32_9 : i32
    %11 = arith.extui %10 : i1 to i32
    %c0_i32_10 = arith.constant 0 : i32
    %12 = arith.cmpi ne, %11, %c0_i32_10 : i32
    scf.if %12 {
      %c0_11 = arith.constant 0 : index
      %c0_12 = arith.constant 0 : index
      %13 = vector.load %arg7[%c0_11, %c0_12] : memref<8x256xf32, #tpu.memory_space<vmem>>, vector<8x256xf32>
      %c0_13 = arith.constant 0 : index
      %c0_14 = arith.constant 0 : index
      %14 = vector.load %arg5[%c0_13, %c0_14] : memref<8x1xf32, #tpu.memory_space<vmem>>, vector<8x1xf32>
      %15 = vector.broadcast %14 : vector<8x1xf32> to vector<8x256xf32>
      %16 = arith.addf %13, %15 : vector<8x256xf32>
      %c0_15 = arith.constant 0 : index
      %c0_16 = arith.constant 0 : index
      %c0_17 = arith.constant 0 : index
      %17 = vector.load %arg6[%c0_15, %c0_16, %c0_17] : memref<1x8x256xf32, #tpu.memory_space<vmem>>, vector<1x8x256xf32>
      %18 = vector.shape_cast %17 : vector<1x8x256xf32> to vector<8x256xf32>
      %19 = vector.shape_cast %16 : vector<8x256xf32> to vector<1x8x256xf32>
      tpu.vector_store %arg6[%c0_15, %c0_16, %c0_17], %19 {strides = array<i32>} : memref<1x8x256xf32, #tpu.memory_space<vmem>>, vector<1x8x256xf32>,
    } else {
    }
    return
  }
  func.func @transform_0(%arg0: i32, %arg1: i32, %arg2: i32) -> (i32, i32) {
    %c0_i32 = arith.constant 0 : i32
    %c0_i32_0 = arith.constant 0 : i32
    return %c0_i32, %arg2 : i32, i32
  }
  func.func @transform_1(%arg0: i32, %arg1: i32, %arg2: i32) -> (i32, i32, i32) {
    %c0_i32 = arith.constant 0 : i32
    return %arg0, %arg2, %arg1 : i32, i32, i32
  }
  func.func @transform_2(%arg0: i32, %arg1: i32, %arg2: i32) -> (i32, i32) {
    %c0_i32 = arith.constant 0 : i32
    %c0_i32_0 = arith.constant 0 : i32
    %c0_i32_1 = arith.constant 0 : i32
    return %c0_i32, %c0_i32_0 : i32, i32
  }
  func.func @transform_3(%arg0: i32, %arg1: i32, %arg2: i32) -> (i32, i32, i32) {
    %c0_i32 = arith.constant 0 : i32
    %c0_i32_0 = arith.constant 0 : i32
    return %arg0, %c0_i32, %arg1 : i32, i32, i32
  }
}

</mosaic_0001>

<bundles_post_ra>
// kernel: tpu_custom_call.1
= control target key start
LH: loop header
LB: loop body
LE: loop exit
PB: predicated region body
PF: predicated region fallthrough
CT: control target
= control target key end

     0   :  { %8 = vsyncpa [#allocation4], 0  ;;  %s779_s0 = inlined_call_operand.vmem [shape: bf16[8,36], index: 0, kind: input, shape index: {}]   ;;  %s780_s1 = inlined_call_operand.vmem [shape: bf16[2,36,256], index: 1, kind: input, shape index: {}]   ;;  %s781_s2 = inlined_call_operand.vmem [shape: f32[8,1], index: 2, kind: input, shape index: {}]   ;;  %s782_s3 = inlined_call_operand.hbm [shape: f32[2,8,256], index: 3, kind: output, shape index: {}]  }
   0x1   :  { %10 = vsyncpa [#allocation4 + $0x1], 0  ;;  %s661_s12 = smov 0   ;;  %s663_s13 = smov 0  }
   0x2   :  { %s665_s14 = smov 0   ;;  %s667_s15 = smov 0  }
   0x3   :  { %s669_s16 = smov 0   ;;  %s671_s17 = smov 0  }
   0x4 LB: > { %s471_s18 = sadd.s32 4294967295, %s637_s17   ;;  %s472_s19 = sadd.s32 4294967294, %s637_s17   ;;  %s637_s17 = sphi %s671_s17, %s16_s17   ;;  %s633_s16 = sphi %s669_s16, %s789_s16   ;;  %s629_s15 = sphi %s667_s15, %s788_s15   ;;  %s625_s14 = sphi %s665_s14, %s787_s14   ;;  %s621_s13 = sphi %s663_s13, %s786_s13   ;;  %s617_s12 = sphi %s661_s12, %s785_s12  }
   0x5   : > { %s35_s20 = sadd.s32 1, %s633_s16  ;;  %s121_s21 = sadd.s32 1, %s625_s14 }
   0x6   : > { %p37_p0 = scmp.ge.s32.totalorder %s35_s20, 2  ;;  %p131_p1 = scmp.ne.s32.totalorder %s625_s14, %s621_s13 }
   0x7   : > { %p132_p2 = scmp.eq.s32.totalorder %s471_s18, 1  ;;  %p137_p3 = scmp.ne.s32.totalorder %s621_s13, %s617_s12 }
   0x8   : > { %s791_s20 = smov (%p37_p0, %s35_s20), 0  ;;  %p138_p5 = scmp.eq.s32.totalorder %s472_s19, 1 }
   0x9   : > { %p701_p4 = por %p132_p2, %p131_p1  ;;  %s116_s23 = ssub.s32 %s633_s16, %s791_s20 }
   0xa   : > { %p476_p6 = scmp.ge.s32.totalorder %s637_s17, 1  ;;  %p119_p7 = scmp.eq.s32.totalorder %s116_s23, 0 }
   0xb   : > { %p708_p8 = por %p138_p5, %p137_p3  ;;  %p185_p9 = scmp.lt.s32.totalorder %s637_s17, 3 }
   0xc   : > { %s714_s25 = scalar_select %p119_p7, %s625_s14, %s121_s21  }
   0xd   : > { %p186_p10 = pnand %p476_p6, %p185_p9 }
   0xe   : > { %p228_p11 = scmp.lt.s32.totalorder (!%p186_p10), %s629_s15, 1  ;;  %v639_v0 = vmov (!%p186_p10), 0   ;;  %v344_v1 = vld [vmem:[%s781_s2] sm:$0xff] (!%p186_p10)  ;;  %vm287_vm0 = vcmask (!%p186_p10), 1041408   ;;  %vm283_vm1 = vcmask (!%p186_p10), 293888   ;;  %s219_s8 = sand.u32 (!%p186_p10), 1, %s621_s13  }
   0xf   : > { %189 = sbr.rel (%p186_p10) target bundleno = 269 (0x10d), region = 32  ;;  %326 = vmatprep.mubr.bf16.mxu0 (!%p186_p10), %v639_v0  ;;  %550 = vset.pattern.permute.xlu0 (!%p186_p10), %v639_v0  ;;  %v252_v10 = vld [vmem:[%s779_s0] sm:$0xf] (!%p186_p10)  ;;  %s477_s9 = sshll.u32 (!%p186_p10), %s219_s8, 4 }
  0x10   : > { %347 = vperm.xlu0 (!%p186_p10), %550, %v344_v1   ;;  %s492_s10 = sshll.u32 (!%p186_p10), %s629_s15, 8  ;;  %s221_s11 = scalar_lea.vmem (!%p186_p10), [#allocation3], %s477_s9 }
  0x11   : > { %s371_s18 = sshll.u32 (!%p186_p10), %s221_s11, 4  ;;  %s732_s23 = scalar_lea.hbm (!%p186_p10), %s782_s3, %s492_s10  ;;  %s734_s18 = int_to_ptr.vmem [resolvable:$true] %s371_s18 }
  0x12   : > { %s559_s26 = scalar_lea.vmem (!%p186_p10), %s734_s18, 256  ;;  %s640_s27 = smov (!%p186_p10), [#allocation3]  }
  0x13   : > { %p560_p12 = scmp.ne.s32.totalorder (!%p186_p10), %s734_s18, %s559_s26 }
  0x15   : > { %p561_p13 = pnand (!%p186_p10), %p560_p12, %p701_p4 }
  0x16   : > { %s229_s28 = scalar_select %p228_p11, %s629_s15, 1 }
  0x17   : > { %s355_s15 = scalar_lea.sflag [#allocation4], %s219_s8  ;;  %p562_p0 = pneg %p561_p13 }
  0x18   : > { %s493_s29 = smul.u32 40, %s229_s28  ;;  %s563_s28 = sshll.u32 %s640_s27, 4  ;;  %s564_s28 = int_to_ptr.vmem [resolvable:$false] %s563_s28 }
  0x19   : > { %p566_p1 = scmp.lt.s32.totalorder %s734_s18, %s564_s28 }
  0x1a   : > { %s239_s5 = scalar_lea.vmem %s780_s1, %s493_s29  ;;  %s565_s29 = scalar_lea.vmem %s564_s28, 512 }
  0x1b   : > { %v551_v2 = vld [vmem:[%s239_s5 + $0x4] ss:$8 sps:$4 sm:$0xff]   ;;  %v553_v3 = vld [vmem:[%s239_s5] ss:$8 sps:$4 sm:$0xff]   ;;  %v554_v4 = vld [vmem:[%s239_s5 + $0x14] ss:$8 sps:$4 sm:$0xff]   ;;  %p567_p2 = scmp.lt.s32.totalorder %s565_s29, %s559_s26 }
  0x1c   : > { %294 = vmatprep.subr.bf16.mxu0 %v551_v2  ;;  %v257_v5 = vld [vmem:[%s239_s5 + $0x20] sm:$0x33]  ;;  %v556_v6 = vld [vmem:[%s239_s5 + $0x10] ss:$8 sps:$4 sm:$0xff]  }
  0x1d   : > { %295 = vmatpush1.bf16.msra.mxu0 %v553_v3  ;;  %v484_v7 = vcombine.high %v257_v5, %v257_v5  ;;  %v483_v8 = vcombine.low %v257_v5, %v257_v5  ;;  %p568_p3 = por %p567_p2, %p566_p1 }
  0x1e   : > { %296 = vmatprep.subr.bf16.mxu0 %v554_v4 }
  0x1f   : > { %v289_v9 = vsel %vm287_vm0, %v483_v8, 0  ;;  %p569_p5 = pnand %p568_p3, %p562_p0 }
  0x21   : > { %297 = vmatpush1.bf16.msra.mxu0 %v556_v6 }
  0x22   : > { %485 = vmatprep.subr.msk.bf16.mxu0 %vm287_vm0, %v484_v7 }
  0x25   : > { %299 = vmatpush1.bf16.msra.mxu0 %v289_v9 }
  0x28   : > { %486 = vmatmul.mubr.msk.bf16.vlgmr.msra.gmra.mrb[0].mxu0 %vm283_vm1, %v252_v10 }
  0x8f   : > { %v348_v11 = vpop.permute.xlu0 %347 }
  0xfb   : > { %v328_v12 = vpop.f32.mrb[0].mxu0 }
  0xfc   : > { %v350_v13 = vadd.f32 %v348_v11, %v328_v12  ;;  %v330_v14 = vpop.f32.mrb[1].mxu0 }
  0xfd   : > { %v351_v15 = vadd.f32 %v348_v11, %v330_v14  ;;  %v332_v16 = vpop.f32.mrb[2].mxu0 }
  0xfe   : > { %352 = vst [vmem:[%s221_s11] sm:$0xff] %v350_v13  ;;  %v333_v17 = vpop.f32.mrb[3].mxu0 }
  0xff   : > { %353 = vst [vmem:[%s221_s11 + $0x8] sm:$0xff] %v351_v15 }
 0x100   : > { %572 = shalt.err (!%p569_p5)
}
 0x101   : > { %s573_s30 = scalar_lea.hbm %s732_s23, 256  ;;  %s577_s6 = scalar_lea.hbm %s782_s3, 512 }
 0x102   : > { %p574_p6 = scmp.ne.s32.totalorder %s732_s23, %s573_s30  ;;  %p578_p10 = scmp.lt.u32.totalorder %s732_s23, %s782_s3 }
 0x103   : > { %p579_p11 = scmp.lt.u32.totalorder %s577_s6, %s573_s30  ;;  %p581_p13 = scmp.lt.u32.totalorder %s573_s30, %s732_s23 }
 0x104   : > { %p575_p7 = pnand %p574_p6, %p701_p4 }
 0x105   : > { %p580_p12 = por %p579_p11, %p578_p10 }
 0x106   : > { %p576_p9 = pneg %p575_p7 }
 0x107   : > { %p582_p0 = por %p581_p13, %p580_p12 }
 0x109   : > { %p583_p1 = pnand %p582_p0, %p576_p9 }
 0x10b   : > { %586 = shalt.err (!%p583_p1)
}
 0x10c   : > { %494 = dma.vmem_to_hbm [thread:$0]  (%p701_p4), %s734_s18, 256, %s732_s23, %s355_s15  }
 0x10d PF: > { %p500_p2 = scmp.ge.s32.totalorder %s637_s17, 2  ;;  %s383_s9 = sand.u32 1, %s617_s12  }
 0x10e   : > { %s384_s10 = scalar_lea.sflag [#allocation4], %s383_s9 }
 0x10f   : > { %p497_p3 = pnand %p500_p2, %p708_p8 }
 0x111   : > { %612 = dma.done.wait (!%p497_p3), %s384_s10, 256  }
 0x112   : > { %614 = vsyncadd (!%p497_p3), %s384_s10, 4294967040  ;;  %s16_s17 = sadd.s32 1, %s637_s17   ;;  %s785_s12 = smov %s621_s13 }
 0x113   : > { %p13_p5 = scmp.ge.s32.totalorder %s16_s17, 4   ;;  %s786_s13 = smov %s625_s14 }
 0x114   : > { %s787_s14 = smov %s714_s25  ;;  %s788_s15 = smov %s633_s16 }
 0x115   : > { %s789_s16 = smov %s791_s20  ;;  %15 = sbr.rel (!%p13_p5) target bundleno = 4 (0x4), region = 78 }
 0x11c   :  { %389 = vsyncpa [#allocation4], 1 }
 0x11d   :  { %391 = vsyncpa [#allocation4 + $0x1], 1 }

</bundles_post_ra>
